<compile_context>
chip_gen: v6e
topology: v6e:2x2x1
jax: 0.10.0
libtpu: 0.0.40
codegen_flags: <defaults>
</compile_context>

<pallas_src>
import jax
import jax.numpy as jnp
from jax.experimental import pallas as pl
from jax.experimental.pallas import tpu as pltpu

_HIDDEN = 64   # module's hidden width
_LANE = 128    # TPU lane width; hidden/action dims padded to this


def _round_up(x, m):
    return (x + m - 1) // m * m


def _qnet_kernel(x_ref, w1_ref, b1_ref, w2_ref, b2_ref, w3_ref, b3_ref, out_ref):
    # x: (TB, S) in the compute dtype (bf16 by default)
    x = x_ref[...]

    # fc1 + ReLU -> (TB, 128); f32 accumulation, f32 bias add / ReLU
    h1 = jnp.dot(x, w1_ref[...], preferred_element_type=jnp.float32) + b1_ref[...]
    h1 = jnp.maximum(h1, 0.0)

    # fc2 + ReLU -> (TB, 128)
    h2 = jnp.dot(h1.astype(w2_ref.dtype), w2_ref[...],
                 preferred_element_type=jnp.float32) + b2_ref[...]
    h2 = jnp.maximum(h2, 0.0)

    # fc3 -> (TB, 128); columns >= action_size are exactly zero (zero-padded W/b)
    q = jnp.dot(h2.astype(w3_ref.dtype), w3_ref[...],
                preferred_element_type=jnp.float32) + b3_ref[...]
    out_ref[...] = q.astype(out_ref.dtype)


def _prep_params(params, compute_dtype):
    """Zero-pad hidden/action dims to 128 lanes; cast weights to compute dtype."""
    w1, b1 = params["w1"], params["b1"]
    w2, b2 = params["w2"], params["b2"]
    w3, b3 = params["w3"], params["b3"]
    A = w3.shape[1]

    w1p = jnp.pad(w1, ((0, 0), (0, _LANE - _HIDDEN))).astype(compute_dtype)
    w2p = jnp.pad(w2, ((0, _LANE - _HIDDEN), (0, _LANE - _HIDDEN))).astype(compute_dtype)
    w3p = jnp.pad(w3, ((0, _LANE - _HIDDEN), (0, _LANE - A))).astype(compute_dtype)
    # Biases stay f32 (added to the f32 accumulator), as (1, 128) lane rows.
    b1p = jnp.pad(b1, (0, _LANE - _HIDDEN)).reshape(1, _LANE).astype(jnp.float32)
    b2p = jnp.pad(b2, (0, _LANE - _HIDDEN)).reshape(1, _LANE).astype(jnp.float32)
    b3p = jnp.pad(b3, (0, _LANE - A)).reshape(1, _LANE).astype(jnp.float32)
    return w1p, b1p, w2p, b2p, w3p, b3p


def qnetwork_forward(state, params, *, block_b=512, compute_dtype=jnp.bfloat16):
    """Fused 3-layer MLP forward as one batch-tiled Pallas TPU kernel.

    state : [B, state_size] float32
    params: dict w1[S,64] b1[64] w2[64,64] b2[64] w3[64,A] b3[A] (f32, [in,out])
    Returns [B, action_size] float32 Q-values.
    """
    B, S = state.shape
    A = params["w3"].shape[1]

    w1p, b1p, w2p, b2p, w3p, b3p = _prep_params(params, compute_dtype)

    # Batch tile: sublane-aligned, capped at block_b; pad B up to a multiple.
    TB = block_b if B >= block_b else _round_up(B, 8)
    Bp = _round_up(B, TB)
    x = state.astype(compute_dtype)
    if Bp != B:
        x = jnp.pad(x, ((0, Bp - B), (0, 0)))

    const = lambda i: (0, 0)  # weights/biases: same block every step -> stay in VMEM

    out = pl.pallas_call(
        _qnet_kernel,
        out_shape=jax.ShapeDtypeStruct((Bp, _LANE), jnp.float32),
        grid=(Bp // TB,),
        in_specs=[
            pl.BlockSpec((TB, S), lambda i: (i, 0)),   # state: marches over batch
            pl.BlockSpec((S, _LANE), const),           # w1
            pl.BlockSpec((1, _LANE), const),           # b1
            pl.BlockSpec((_LANE, _LANE), const),       # w2
            pl.BlockSpec((1, _LANE), const),           # b2
            pl.BlockSpec((_LANE, _LANE), const),       # w3
            pl.BlockSpec((1, _LANE), const),           # b3
        ],
        out_specs=pl.BlockSpec((TB, _LANE), lambda i: (i, 0)),
        compiler_params=pltpu.CompilerParams(
            dimension_semantics=("parallel",)),        # megacore split on v7x
    )(x, w1p, b1p, w2p, b2p, w3p, b3p)

    return out[:B, :A]


def init_qnetwork_params(key, state_size, action_size):
    """Deterministic init mirroring nn.Linear default (uniform +/- 1/sqrt(fan_in))."""
    def linear(k, fan_in, fan_out):
        kw, kb = jax.random.split(k)
        bound = 1.0 / jnp.sqrt(jnp.float32(fan_in))
        # stored as [in, out] (transpose of torch's [out, in])
        w = jax.random.uniform(kw, (fan_in, fan_out), jnp.float32, -bound, bound)
        b = jax.random.uniform(kb, (fan_out,), jnp.float32, -bound, bound)
        return w, b

    k1, k2, k3 = jax.random.split(key, 3)
    w1, b1 = linear(k1, state_size, 64)
    w2, b2 = linear(k2, 64, 64)
    w3, b3 = linear(k3, 64, action_size)
    return {"w1": w1, "b1": b1, "w2": w2, "b2": b2, "w3": w3, "b3": b3}


def qnetwork_reference(state, params, compute_dtype=jnp.float32):
    """Pure-JAX reference. compute_dtype mirrors the kernel's weight/act cast."""
    cd = compute_dtype
    h1 = jnp.maximum(
        jnp.dot(state.astype(cd), params["w1"].astype(cd),
                preferred_element_type=jnp.float32) + params["b1"], 0.0)
    h2 = jnp.maximum(
        jnp.dot(h1.astype(cd), params["w2"].astype(cd),
                preferred_element_type=jnp.float32) + params["b2"], 0.0)
    return jnp.dot(h2.astype(cd), params["w3"].astype(cd),
                   preferred_element_type=jnp.float32) + params["b3"]


if __name__ == "__main__":
    # LunarLander-v2: state_size=8, action_size=4.
    # Use a replay-minibatch-sized batch so the kernel isn't pure launch overhead;
    # block_b=128 -> grid of 2 steps to exercise the batch tiling + weight residency.
    STATE_SIZE = 8
    ACTION_SIZE = 4
    BATCH = 256

    key = jax.random.PRNGKey(0)
    k_params, k_state = jax.random.split(key)

    params = init_qnetwork_params(k_params, STATE_SIZE, ACTION_SIZE)
    state = jax.random.normal(k_state, (BATCH, STATE_SIZE), jnp.float32)

    out = qnetwork_forward(state, params, block_b=128)
    out = jax.block_until_ready(out)
    assert out.shape == (BATCH, ACTION_SIZE)

    # Precision-matched reference (same bf16 casts, f32 accumulation): tight check.
    ref_bf16 = qnetwork_reference(state, params, compute_dtype=jnp.bfloat16)
    assert jnp.allclose(out, ref_bf16, atol=1e-4, rtol=1e-4), "mismatch vs bf16-matched reference"

    # Full-f32 reference (original torch semantics): loose check for bf16 MXU inputs.
    ref_f32 = qnetwork_reference(state, params, compute_dtype=jnp.float32)
    assert jnp.allclose(out, ref_f32, atol=3e-2, rtol=3e-2), "mismatch vs f32 reference"

    print("KERNEL_OK")
</pallas_src>

<mosaic_0001>
module attributes {stable_mosaic.version = 11 : i64} {
  func.func @_qnet_kernel(%arg0: i32, %arg1: memref<128x8xbf16, #tpu.memory_space<vmem>>, %arg2: memref<8x128xbf16, #tpu.memory_space<vmem>>, %arg3: memref<1x128xf32, #tpu.memory_space<vmem>>, %arg4: memref<128x128xbf16, #tpu.memory_space<vmem>>, %arg5: memref<1x128xf32, #tpu.memory_space<vmem>>, %arg6: memref<128x128xbf16, #tpu.memory_space<vmem>>, %arg7: memref<1x128xf32, #tpu.memory_space<vmem>>, %arg8: memref<128x128xf32, #tpu.memory_space<vmem>>) attributes {dimension_semantics = [#tpu.dimension_semantics<parallel>], iteration_bounds = array<i64: 2>, scalar_prefetch = 0 : i64, scratch_operands = 0 : i64, tpu.core_type = #tpu.core_type<tc>, window_params = [{transform_indices = @transform_0, window_bounds = array<i64: 128, 8>}, {pipeline_mode = #tpu.pipeline_mode<synchronous>, transform_indices = @transform_1, window_bounds = array<i64: 8, 128>}, {pipeline_mode = #tpu.pipeline_mode<synchronous>, transform_indices = @transform_2, window_bounds = array<i64: 1, 128>}, {pipeline_mode = #tpu.pipeline_mode<synchronous>, transform_indices = @transform_3, window_bounds = array<i64: 128, 128>}, {pipeline_mode = #tpu.pipeline_mode<synchronous>, transform_indices = @transform_4, window_bounds = array<i64: 1, 128>}, {pipeline_mode = #tpu.pipeline_mode<synchronous>, transform_indices = @transform_5, window_bounds = array<i64: 128, 128>}, {pipeline_mode = #tpu.pipeline_mode<synchronous>, transform_indices = @transform_6, window_bounds = array<i64: 1, 128>}, {transform_indices = @transform_7, window_bounds = array<i64: 128, 128>}]} {
    %c0 = arith.constant 0 : index
    %c0_0 = arith.constant 0 : index
    %0 = vector.load %arg1[%c0, %c0_0] : memref<128x8xbf16, #tpu.memory_space<vmem>>, vector<128x8xbf16>
    %c0_1 = arith.constant 0 : index
    %c0_2 = arith.constant 0 : index
    %1 = vector.load %arg2[%c0_1, %c0_2] : memref<8x128xbf16, #tpu.memory_space<vmem>>, vector<8x128xbf16>
    %cst = arith.constant dense<0.000000e+00> : vector<128x128xf32>
    %2 = tpu.matmul %0, %1, %cst {dimension_numbers = #tpu.dot_dimension_numbers<[1], [0], [0], [1], [0, 0, 1, 1], [], []>} : vector<128x8xbf16>, vector<8x128xbf16>, vector<128x128xf32> -> vector<128x128xf32>
    %c0_3 = arith.constant 0 : index
    %c0_4 = arith.constant 0 : index
    %3 = vector.load %arg3[%c0_3, %c0_4] : memref<1x128xf32, #tpu.memory_space<vmem>>, vector<1x128xf32>
    %4 = vector.broadcast %3 : vector<1x128xf32> to vector<128x128xf32>
    %5 = arith.addf %2, %4 : vector<128x128xf32>
    %cst_5 = arith.constant 0.000000e+00 : f32
    %6 = vector.broadcast %cst_5 : f32 to vector<128x128xf32>
    %7 = arith.maximumf %5, %6 : vector<128x128xf32>
    %8 = arith.truncf %7 : vector<128x128xf32> to vector<128x128xbf16>
    %c0_6 = arith.constant 0 : index
    %c0_7 = arith.constant 0 : index
    %9 = vector.load %arg4[%c0_6, %c0_7] : memref<128x128xbf16, #tpu.memory_space<vmem>>, vector<128x128xbf16>
    %cst_8 = arith.constant dense<0.000000e+00> : vector<128x128xf32>
    %10 = tpu.matmul %8, %9, %cst_8 {dimension_numbers = #tpu.dot_dimension_numbers<[1], [0], [0], [1], [0, 0, 1, 1], [], []>} : vector<128x128xbf16>, vector<128x128xbf16>, vector<128x128xf32> -> vector<128x128xf32>
    %c0_9 = arith.constant 0 : index
    %c0_10 = arith.constant 0 : index
    %11 = vector.load %arg5[%c0_9, %c0_10] : memref<1x128xf32, #tpu.memory_space<vmem>>, vector<1x128xf32>
    %12 = vector.broadcast %11 : vector<1x128xf32> to vector<128x128xf32>
    %13 = arith.addf %10, %12 : vector<128x128xf32>
    %cst_11 = arith.constant 0.000000e+00 : f32
    %14 = vector.broadcast %cst_11 : f32 to vector<128x128xf32>
    %15 = arith.maximumf %13, %14 : vector<128x128xf32>
    %16 = arith.truncf %15 : vector<128x128xf32> to vector<128x128xbf16>
    %c0_12 = arith.constant 0 : index
    %c0_13 = arith.constant 0 : index
    %17 = vector.load %arg6[%c0_12, %c0_13] : memref<128x128xbf16, #tpu.memory_space<vmem>>, vector<128x128xbf16>
    %cst_14 = arith.constant dense<0.000000e+00> : vector<128x128xf32>
    %18 = tpu.matmul %16, %17, %cst_14 {dimension_numbers = #tpu.dot_dimension_numbers<[1], [0], [0], [1], [0, 0, 1, 1], [], []>} : vector<128x128xbf16>, vector<128x128xbf16>, vector<128x128xf32> -> vector<128x128xf32>
    %c0_15 = arith.constant 0 : index
    %c0_16 = arith.constant 0 : index
    %19 = vector.load %arg7[%c0_15, %c0_16] : memref<1x128xf32, #tpu.memory_space<vmem>>, vector<1x128xf32>
    %20 = vector.broadcast %19 : vector<1x128xf32> to vector<128x128xf32>
    %21 = arith.addf %18, %20 : vector<128x128xf32>
    %c0_17 = arith.constant 0 : index
    %c0_18 = arith.constant 0 : index
    %22 = vector.load %arg8[%c0_17, %c0_18] : memref<128x128xf32, #tpu.memory_space<vmem>>, vector<128x128xf32>
    tpu.vector_store %arg8[%c0_17, %c0_18], %21 {strides = array<i32>} : memref<128x128xf32, #tpu.memory_space<vmem>>, vector<128x128xf32>,
    return
  }
  func.func @transform_0(%arg0: i32) -> (i32, i32) {
    %c0_i32 = arith.constant 0 : i32
    %c0_i32_0 = arith.constant 0 : i32
    return %arg0, %c0_i32 : i32, i32
  }
  func.func @transform_1(%arg0: i32) -> (i32, i32) {
    %c0_i32 = arith.constant 0 : i32
    %c0_i32_0 = arith.constant 0 : i32
    %c0_i32_1 = arith.constant 0 : i32
    return %c0_i32, %c0_i32_0 : i32, i32
  }
  func.func @transform_2(%arg0: i32) -> (i32, i32) {
    %c0_i32 = arith.constant 0 : i32
    %c0_i32_0 = arith.constant 0 : i32
    %c0_i32_1 = arith.constant 0 : i32
    return %c0_i32, %c0_i32_0 : i32, i32
  }
  func.func @transform_3(%arg0: i32) -> (i32, i32) {
    %c0_i32 = arith.constant 0 : i32
    %c0_i32_0 = arith.constant 0 : i32
    %c0_i32_1 = arith.constant 0 : i32
    return %c0_i32, %c0_i32_0 : i32, i32
  }
  func.func @transform_4(%arg0: i32) -> (i32, i32) {
    %c0_i32 = arith.constant 0 : i32
    %c0_i32_0 = arith.constant 0 : i32
    %c0_i32_1 = arith.constant 0 : i32
    return %c0_i32, %c0_i32_0 : i32, i32
  }
  func.func @transform_5(%arg0: i32) -> (i32, i32) {
    %c0_i32 = arith.constant 0 : i32
    %c0_i32_0 = arith.constant 0 : i32
    %c0_i32_1 = arith.constant 0 : i32
    return %c0_i32, %c0_i32_0 : i32, i32
  }
  func.func @transform_6(%arg0: i32) -> (i32, i32) {
    %c0_i32 = arith.constant 0 : i32
    %c0_i32_0 = arith.constant 0 : i32
    %c0_i32_1 = arith.constant 0 : i32
    return %c0_i32, %c0_i32_0 : i32, i32
  }
  func.func @transform_7(%arg0: i32) -> (i32, i32) {
    %c0_i32 = arith.constant 0 : i32
    %c0_i32_0 = arith.constant 0 : i32
    return %arg0, %c0_i32 : i32, i32
  }
}

</mosaic_0001>

<bundles_post_ra>
// kernel: tpu_custom_call.1
= control target key start
LH: loop header
LB: loop body
LE: loop exit
PB: predicated region body
PF: predicated region fallthrough
CT: control target
= control target key end

     0   :  { %12 = vsyncpa [#allocation3], 0  ;;  %s1481_s0 = inlined_call_operand.vmem [shape: bf16[256,8], index: 0, kind: input, shape index: {}]   ;;  %s1482_s1 = inlined_call_operand.vmem [shape: bf16[8,128], index: 1, kind: input, shape index: {}]   ;;  %s1483_s2 = inlined_call_operand.vmem [shape: f32[1,128], index: 2, kind: input, shape index: {}]   ;;  %s1484_s3 = inlined_call_operand.vmem [shape: bf16[128,128], index: 3, kind: input, shape index: {}]   ;;  %s1485_s4 = inlined_call_operand.vmem [shape: f32[1,128], index: 4, kind: input, shape index: {}]   ;;  %s1486_s5 = inlined_call_operand.vmem [shape: bf16[128,128], index: 5, kind: input, shape index: {}]   ;;  %s1487_s6 = inlined_call_operand.vmem [shape: f32[1,128], index: 6, kind: input, shape index: {}]   ;;  %s1488_s7 = inlined_call_operand.hbm [shape: f32[256,128], index: 7, kind: output, shape index: {}]  }
   0x1   :  { %14 = vsyncpa [#allocation3 + $0x1], 0  ;;  %s1289_s24 = smov 0   ;;  %s1291_s25 = smov 0  }
   0x2   :  { %s1293_s26 = smov 0   ;;  %s1295_s27 = smov 0  }
   0x3 LB: > { %s1310_s28 = sadd.s32 4294967295, %s1244_s27   ;;  %s947_s29 = sadd.s32 4294967294, %s1244_s27   ;;  %s1244_s27 = sphi %s1295_s27, %s1494_s27   ;;  %s1240_s26 = sphi %s1293_s26, %s1493_s26   ;;  %s1236_s25 = sphi %s1291_s25, %s1492_s25   ;;  %s1232_s24 = sphi %s1289_s24, %s1491_s24  }
   0x4   : > { %s1314_s30 = sadd.s32 1, %s1244_s27   ;;  %s179_s8 = sadd.s32 1, %s1240_s26 }
   0x5   : > { %s176_s9 = ssub.s32 %s1244_s27, %s1314_s30  ;;  %p189_p0 = scmp.ne.s32.totalorder %s1240_s26, %s1236_s25 }
   0x6   : > { %p177_p1 = scmp.eq.s32.totalorder %s176_s9, 0  ;;  %p190_p2 = scmp.eq.s32.totalorder %s1310_s28, 1 }
   0x7   : > { %p195_p3 = scmp.ne.s32.totalorder %s1236_s25, %s1232_s24  ;;  %p196_p4 = scmp.eq.s32.totalorder %s947_s29, 1 }
   0x8   : > { %s1325_s10 = scalar_select %p177_p1, %s1240_s26, %s179_s8  }
   0x9   : > { %p1327_p5 = por %p190_p2, %p189_p0  ;;  %p1331_p6 = por %p196_p4, %p195_p3 }
   0xa   : > { %p950_p7 = scmp.ge.s32.totalorder %s1244_s27, 1  ;;  %p241_p8 = scmp.lt.s32.totalorder %s1244_s27, 3 }
   0xc   : > { %p242_p9 = pnand %p950_p7, %p241_p8 }
   0xd   : > { %s952_s15 = sshll.u32 (!%p242_p9), %s1310_s28, 4  ;;  %s270_s14 = sand.u32 (!%p242_p9), 1, %s1236_s25  }
   0xe   : > { %245 = sbr.rel (%p242_p9) target bundleno = 675 (0x2a3), region = 48  ;;  %p274_p10 = scmp.lt.s32.totalorder (!%p242_p9), %s952_s15, 31 }
   0xf   : > { %s994_s19 = sshll.u32 (!%p242_p9), %s1310_s28, 11  ;;  %s1441_s28 = scalar_lea.sflag (!%p242_p9), [#allocation3], %s270_s14 }
  0x10   : > { %s1433_s23 = scalar_lea.hbm (!%p242_p9), %s1488_s7, %s994_s19 }
  0x13   : > { %v297_v0 = vld [vmem:[%s1482_s1] sm:$0xf]  ;;  %vm370_vm0 = vcmask 1043456   ;;  %v1168_v1 = vld [vmem:[%s1484_s3 + $0x38] sm:$0xff]   ;;  %v1169_v3 = vld [vmem:[%s1484_s3 + $0x30] sm:$0xff]   ;;  %s1496_s15 = smov (!%p274_p10, %s952_s15), 31 }
  0x14   : > { %1118 = vmatprep.subr.msk.bf16.mxu0 %vm370_vm0, %v297_v0  ;;  %v372_v2 = vsel %vm370_vm0, %v297_v0, 0  ;;  %1054 = vmatprep.subr.bf16.mxu1 %v1168_v1  ;;  %v1170_v4 = vld [vmem:[%s1484_s3 + $0x28] sm:$0xff]   ;;  %s953_s22 = sshll.u32 %s1496_s15, 2  ;;  %vm345_vm1 = vcmask 64512   ;;  %v1171_v5 = vld [vmem:[%s1484_s3 + $0x20] sm:$0xff]   ;;  %v1172_v9 = vld [vmem:[%s1484_s3 + $0x18] sm:$0xff]  }
  0x15   : > { %1037 = vmatpush3.bf16.msra.mxu0 %v372_v2  ;;  %1055 = vmatpush3.bf16.msra.mxu1 %v1168_v1  ;;  %s277_s8 = scalar_lea.vmem %s1481_s0, %s953_s22  ;;  %v1173_v15 = vld [vmem:[%s1484_s3 + $0x10] sm:$0xff]   ;;  %v1174_v16 = vld [vmem:[%s1484_s3 + $0x8] sm:$0xff]   ;;  %v1175_v17 = vld [vmem:[%s1484_s3] sm:$0xff]   ;;  %s951_s15 = sshll.u32 %s270_s14, 7 }
  0x16   : > { %1056 = vmatprep.subr.bf16.mxu1 %v1169_v3  ;;  %v1160_v6 = vld [vmem:[%s277_s8] sm:$0xff]   ;;  %v1161_v7 = vld [vmem:[%s277_s8 + $0x8] sm:$0xff]   ;;  %v1162_v8 = vld [vmem:[%s277_s8 + $0x10] sm:$0xff]   ;;  %s1412_s18 = scalar_lea.vmem [#allocation2], %s951_s15 }
  0x17   : > { %1038 = vmatprep.mubr.msk.bf16.mxu0 %vm345_vm1, %v1160_v6  ;;  %v1163_v10 = vld [vmem:[%s277_s8 + $0x18] sm:$0xff]   ;;  %v1164_v11 = vld [vmem:[%s277_s8 + $0x20] sm:$0xff]   ;;  %v1165_v12 = vld [vmem:[%s277_s8 + $0x28] sm:$0xff]   ;;  %s885_s20 = sshll.u32 %s1412_s18, 4  ;;  %s1435_s20 = int_to_ptr.vmem [resolvable:$true] %s885_s20 }
  0x18   : > { %1039 = vmatmul.mubr.msk.bf16.vlgmr.msra.gmra.mxu0 %vm345_vm1, %v1161_v7  ;;  %v1166_v13 = vld [vmem:[%s277_s8 + $0x30] sm:$0xff]   ;;  %v1167_v14 = vld [vmem:[%s277_s8 + $0x38] sm:$0xff]   ;;  %v1178_v20 = vld [vmem:[%s1486_s5 + $0x28] sm:$0xff]   ;;  %s1184_s29 = scalar_lea.vmem %s1435_s20, 2048  ;;  %s1246_s8 = smov [#allocation2]  }
  0x19   : > { %1057 = vmatpush3.bf16.msra.mxu1 %v1169_v3  ;;  %1042 = vmatprep.mubr.msk.bf16.mxu0 %vm345_vm1, %v1162_v8  ;;  %v1176_v18 = vld [vmem:[%s1486_s5 + $0x38] sm:$0xff]   ;;  %v1177_v19 = vld [vmem:[%s1486_s5 + $0x30] sm:$0xff]   ;;  %v1179_v21 = vld [vmem:[%s1486_s5 + $0x20] sm:$0xff]   ;;  %p1185_p11 = scmp.ne.s32.totalorder %s1435_s20, %s1184_s29  ;;  %s1188_s9 = sshll.u32 %s1246_s8, 4  ;;  %s1189_s9 = int_to_ptr.vmem [resolvable:$false] %s1188_s9 }
  0x1a   : > { %1058 = vmatprep.subr.bf16.mxu1 %v1170_v4  ;;  %1086 = vmatprep.subr.bf16.mxu0 %v1176_v18  ;;  %v1180_v22 = vld [vmem:[%s1486_s5 + $0x18] sm:$0xff]   ;;  %v954_v25 = vld [vmem:[%s1483_s2] ss:$0 sm:$0xff]  ;;  %s1190_s13 = scalar_lea.vmem %s1189_s9, 4096  ;;  %p1191_p0 = scmp.lt.s32.totalorder %s1435_s20, %s1189_s9 }
  0x1b   : > { %1087 = vmatpush3.bf16.msra.mxu0 %v1176_v18  ;;  %v1183_v18 = vld [vmem:[%s1486_s5] sm:$0xff]   ;;  %p1186_p12 = pnand %p1185_p11, %p1327_p5  ;;  %p1192_p1 = scmp.lt.s32.totalorder %s1190_s13, %s1184_s29 }
  0x1c   : > { %1088 = vmatprep.subr.bf16.mxu0 %v1177_v19 }
  0x1d   : > { %1059 = vmatpush3.bf16.msra.mxu1 %v1170_v4  ;;  %p1187_p13 = pneg %p1186_p12  ;;  %p1193_p2 = por %p1192_p1, %p1191_p0 }
  0x1e   : > { %1060 = vmatprep.subr.bf16.mxu1 %v1171_v5 }
  0x1f   : > { %1089 = vmatpush3.bf16.msra.mxu0 %v1177_v19  ;;  %p1194_p3 = pnand %p1193_p2, %p1187_p13 }
  0x20   : > { %1043 = vmatmul.mubr.msk.bf16.gmra.mxu0 %vm345_vm1, %v1163_v10  ;;  %1090 = vmatprep.subr.bf16.mxu0 %v1178_v20 }
  0x21   : > { %1061 = vmatpush3.bf16.msra.mxu1 %v1171_v5  ;;  %1046 = vmatprep.mubr.msk.bf16.mxu0 %vm345_vm1, %v1164_v11 }
  0x22   : > { %1062 = vmatprep.subr.bf16.mxu1 %v1172_v9 }
  0x23   : > { %1091 = vmatpush3.bf16.msra.mxu0 %v1178_v20 }
  0x24   : > { %1092 = vmatprep.subr.bf16.mxu0 %v1179_v21 }
  0x25   : > { %1063 = vmatpush3.bf16.msra.mxu1 %v1172_v9 }
  0x26   : > { %1064 = vmatprep.subr.bf16.mxu1 %v1173_v15 }
  0x27   : > { %1093 = vmatpush3.bf16.msra.mxu0 %v1179_v21  ;;  %v971_v21 = vld [vmem:[%s1485_s4] ss:$0 sm:$0xff] }
  0x28   : > { %1047 = vmatmul.mubr.msk.bf16.gmra.mxu0 %vm345_vm1, %v1165_v12  ;;  %1094 = vmatprep.subr.bf16.mxu0 %v1180_v22 }
  0x29   : > { %1050 = vmatprep.mubr.msk.bf16.mxu0 %vm345_vm1, %v1166_v13  ;;  %1065 = vmatpush3.bf16.msra.mxu1 %v1173_v15 }
  0x2a   : > { %1066 = vmatprep.subr.bf16.mxu1 %v1174_v16 }
  0x2b   : > { %1095 = vmatpush3.bf16.msra.mxu0 %v1180_v22 }
  0x2d   : > { %1067 = vmatpush3.bf16.msra.mxu1 %v1174_v16  ;;  %v1181_v16 = vld [vmem:[%s1486_s5 + $0x10] sm:$0xff]  }
  0x2e   : > { %1068 = vmatprep.subr.bf16.mxu1 %v1175_v17  ;;  %1096 = vmatprep.subr.bf16.mxu0 %v1181_v16 }
  0x2f   : > { %1097 = vmatpush3.bf16.msra.mxu0 %v1181_v16 }
  0x30   : > { %1051 = vmatmul.mubr.msk.bf16.gmra.mxu0 %vm345_vm1, %v1167_v14 }
  0x31   : > { %1069 = vmatpush3.bf16.msra.mxu1 %v1175_v17  ;;  %v1182_v17 = vld [vmem:[%s1486_s5 + $0x8] sm:$0xff]  }
  0x32   : > { %1098 = vmatprep.subr.bf16.mxu0 %v1182_v17 }
  0x33   : > { %1099 = vmatpush3.bf16.msra.mxu0 %v1182_v17 }
  0x34   : > { %1100 = vmatprep.subr.bf16.mxu0 %v1183_v18 }
  0x37   : > { %1101 = vmatpush3.bf16.msra.mxu0 %v1183_v18 }
  0xd8   : > { %v1040_v23 = vpop.f32.mrf.mxu0 }
  0xd9   : > { %v417_v29 = vadd.f32 %v1040_v23, %v954_v25 }
  0xda   : > { %v408_v24 = vpop.f32.mrf.mxu0 }
  0xdb   : > { %v409_v27 = vadd.f32 %v954_v25, %v408_v24  ;;  %v473_v36 = vmax.f32 %v417_v29, 0.0 }
  0xdc   : > { %v1041_v26 = vpop.f32.mrf.mxu0 }
  0xdd   : > { %v420_v28 = vadd.f32 %v1041_v26, %v954_v25  ;;  %v471_v34 = vmax.f32 %v409_v27, 0.0 }
  0xde   : > { %v411_v30 = vpop.f32.mrf.mxu0 }
  0xdf   : > { %v412_v31 = vadd.f32 %v954_v25, %v411_v30  ;;  %v474_v32 = vmax.f32 %v420_v28, 0.0 }
  0xe0   : > { %v1044_v33 = vpop.f32.mrf.mxu0 }
  0xe1   : > { %v472_v35 = vmax.f32 %v412_v31, 0.0  ;;  %v488_v39 = vpack.c.bf16 %v474_v32, %v473_v36  ;;  %v433_v43 = vadd.f32 %v1044_v33, %v954_v25 }
  0xe2   : > { %v424_v37 = vpop.f32.mrf.mxu0 }
  0xe3   : > { %v487_v38 = vpack.c.bf16 %v472_v35, %v471_v34  ;;  %v425_v41 = vadd.f32 %v954_v25, %v424_v37  ;;  %v477_v50 = vmax.f32 %v433_v43, 0.0 }
  0xe4   : > { %v1045_v40 = vpop.f32.mrf.mxu0 }
  0xe5   : > { %v436_v42 = vadd.f32 %v1045_v40, %v954_v25  ;;  %1070 = vmatprep.mubr.bf16.mxu1 %v487_v38  ;;  %v475_v48 = vmax.f32 %v425_v41, 0.0 }
  0xe6   : > { %v427_v44 = vpop.f32.mrf.mxu0  ;;  %1071 = vmatmul.mubr.bf16.vlgmr.msra.gmra.mxu1 %v488_v39 }
  0xe7   : > { %v428_v45 = vadd.f32 %v954_v25, %v427_v44  ;;  %v478_v46 = vmax.f32 %v436_v42, 0.0 }
  0xe8   : > { %v1048_v47 = vpop.f32.mrf.mxu0 }
  0xe9   : > { %v476_v49 = vmax.f32 %v428_v45, 0.0  ;;  %v490_v53 = vpack.c.bf16 %v478_v46, %v477_v50  ;;  %v449_v57 = vadd.f32 %v1048_v47, %v954_v25 }
  0xea   : > { %v440_v51 = vpop.f32.mrf.mxu0 }
  0xeb   : > { %v489_v52 = vpack.c.bf16 %v476_v49, %v475_v48  ;;  %v441_v55 = vadd.f32 %v954_v25, %v440_v51  ;;  %v481_v0 = vmax.f32 %v449_v57, 0.0 }
  0xec   : > { %v1049_v54 = vpop.f32.mrf.mxu0 }
  0xed   : > { %v452_v56 = vadd.f32 %v1049_v54, %v954_v25  ;;  %1074 = vmatprep.mubr.bf16.mxu1 %v489_v52  ;;  %v479_v62 = vmax.f32 %v441_v55, 0.0 }
  0xee   : > { %v443_v58 = vpop.f32.mrf.mxu0  ;;  %1075 = vmatmul.mubr.bf16.gmra.mxu1 %v490_v53 }
  0xef   : > { %v444_v59 = vadd.f32 %v954_v25, %v443_v58  ;;  %v482_v60 = vmax.f32 %v452_v56, 0.0 }
  0xf0   : > { %v1052_v61 = vpop.f32.mrf.mxu0 }
  0xf1   : > { %v480_v63 = vmax.f32 %v444_v59, 0.0  ;;  %v492_v3 = vpack.c.bf16 %v482_v60, %v481_v0  ;;  %v465_v7 = vadd.f32 %v1052_v61, %v954_v25 }
  0xf2   : > { %v456_v1 = vpop.f32.mrf.mxu0 }
  0xf3   : > { %v491_v2 = vpack.c.bf16 %v480_v63, %v479_v62  ;;  %v457_v5 = vadd.f32 %v954_v25, %v456_v1  ;;  %v485_v13 = vmax.f32 %v465_v7, 0.0 }
  0xf4   : > { %v1053_v4 = vpop.f32.mrf.mxu0 }
  0xf5   : > { %v468_v6 = vadd.f32 %v1053_v4, %v954_v25  ;;  %1078 = vmatprep.mubr.bf16.mxu1 %v491_v2  ;;  %v483_v11 = vmax.f32 %v457_v5, 0.0 }
  0xf6   : > { %v459_v8 = vpop.f32.mrf.mxu0  ;;  %1079 = vmatmul.mubr.bf16.gmra.mxu1 %v492_v3 }
  0xf7   : > { %v460_v9 = vadd.f32 %v954_v25, %v459_v8  ;;  %v486_v10 = vmax.f32 %v468_v6, 0.0 }
  0xf9   : > { %v484_v12 = vmax.f32 %v460_v9, 0.0  ;;  %v494_v15 = vpack.c.bf16 %v486_v10, %v485_v13 }
  0xfb   : > { %v493_v14 = vpack.c.bf16 %v484_v12, %v483_v11  ;;  %v980_v12 = vld [vmem:[%s1487_s6] ss:$0 sm:$0xff] }
  0xfd   : > { %1082 = vmatprep.mubr.bf16.mxu1 %v493_v14 }
  0xfe   : > { %1083 = vmatmul.mubr.bf16.gmra.mxu1 %v494_v15 }
 0x1a6   : > { %v1072_v19 = vpop.f32.mrf.mxu1 }
 0x1a7   : > { %v609_v25 = vadd.f32 %v1072_v19, %v971_v21 }
 0x1a8   : > { %v600_v20 = vpop.f32.mrf.mxu1 }
 0x1a9   : > { %v601_v23 = vadd.f32 %v971_v21, %v600_v20  ;;  %v665_v32 = vmax.f32 %v609_v25, 0.0 }
 0x1aa   : > { %v1073_v22 = vpop.f32.mrf.mxu1 }
 0x1ab   : > { %v612_v24 = vadd.f32 %v1073_v22, %v971_v21  ;;  %v663_v30 = vmax.f32 %v601_v23, 0.0 }
 0x1ac   : > { %v603_v26 = vpop.f32.mrf.mxu1 }
 0x1ad   : > { %v604_v27 = vadd.f32 %v971_v21, %v603_v26  ;;  %v666_v28 = vmax.f32 %v612_v24, 0.0 }
 0x1ae   : > { %v1076_v29 = vpop.f32.mrf.mxu1 }
 0x1af   : > { %v664_v31 = vmax.f32 %v604_v27, 0.0  ;;  %v680_v35 = vpack.c.bf16 %v666_v28, %v665_v32  ;;  %v625_v39 = vadd.f32 %v1076_v29, %v971_v21 }
 0x1b0   : > { %v616_v33 = vpop.f32.mrf.mxu1 }
 0x1b1   : > { %v679_v34 = vpack.c.bf16 %v664_v31, %v663_v30  ;;  %v617_v37 = vadd.f32 %v971_v21, %v616_v33  ;;  %v669_v46 = vmax.f32 %v625_v39, 0.0 }
 0x1b2   : > { %v1077_v36 = vpop.f32.mrf.mxu1 }
 0x1b3   : > { %v628_v38 = vadd.f32 %v1077_v36, %v971_v21  ;;  %1102 = vmatprep.mubr.bf16.mxu0 %v679_v34  ;;  %v667_v44 = vmax.f32 %v617_v37, 0.0 }
 0x1b4   : > { %v619_v40 = vpop.f32.mrf.mxu1  ;;  %1103 = vmatmul.mubr.bf16.vlgmr.msra.gmra.mxu0 %v680_v35 }
 0x1b5   : > { %v620_v41 = vadd.f32 %v971_v21, %v619_v40  ;;  %v670_v42 = vmax.f32 %v628_v38, 0.0 }
 0x1b6   : > { %v1080_v43 = vpop.f32.mrf.mxu1 }
 0x1b7   : > { %v668_v45 = vmax.f32 %v620_v41, 0.0  ;;  %v682_v49 = vpack.c.bf16 %v670_v42, %v669_v46  ;;  %v641_v53 = vadd.f32 %v1080_v43, %v971_v21 }
 0x1b8   : > { %v632_v47 = vpop.f32.mrf.mxu1 }
 0x1b9   : > { %v681_v48 = vpack.c.bf16 %v668_v45, %v667_v44  ;;  %v633_v51 = vadd.f32 %v971_v21, %v632_v47  ;;  %v673_v60 = vmax.f32 %v641_v53, 0.0 }
 0x1ba   : > { %v1081_v50 = vpop.f32.mrf.mxu1 }
 0x1bb   : > { %v644_v52 = vadd.f32 %v1081_v50, %v971_v21  ;;  %1106 = vmatprep.mubr.bf16.mxu0 %v681_v48  ;;  %v671_v58 = vmax.f32 %v633_v51, 0.0 }
 0x1bc   : > { %v635_v54 = vpop.f32.mrf.mxu1  ;;  %1107 = vmatmul.mubr.bf16.gmra.mxu0 %v682_v49 }
 0x1bd   : > { %v636_v55 = vadd.f32 %v971_v21, %v635_v54  ;;  %v674_v56 = vmax.f32 %v644_v52, 0.0 }
 0x1be   : > { %v1084_v57 = vpop.f32.mrf.mxu1 }
 0x1bf   : > { %v672_v59 = vmax.f32 %v636_v55, 0.0  ;;  %v684_v63 = vpack.c.bf16 %v674_v56, %v673_v60  ;;  %v657_v3 = vadd.f32 %v1084_v57, %v971_v21 }
 0x1c0   : > { %v648_v61 = vpop.f32.mrf.mxu1 }
 0x1c1   : > { %v683_v62 = vpack.c.bf16 %v672_v59, %v671_v58  ;;  %v649_v1 = vadd.f32 %v971_v21, %v648_v61  ;;  %v677_v9 = vmax.f32 %v657_v3, 0.0 }
 0x1c2   : > { %v1085_v0 = vpop.f32.mrf.mxu1 }
 0x1c3   : > { %v660_v2 = vadd.f32 %v1085_v0, %v971_v21  ;;  %1110 = vmatprep.mubr.bf16.mxu0 %v683_v62  ;;  %v675_v7 = vmax.f32 %v649_v1, 0.0 }
 0x1c4   : > { %v651_v4 = vpop.f32.mrf.mxu1  ;;  %1111 = vmatmul.mubr.bf16.gmra.mxu0 %v684_v63 }
 0x1c5   : > { %v652_v5 = vadd.f32 %v971_v21, %v651_v4  ;;  %v678_v6 = vmax.f32 %v660_v2, 0.0 }
 0x1c7   : > { %v676_v8 = vmax.f32 %v652_v5, 0.0  ;;  %v686_v11 = vpack.c.bf16 %v678_v6, %v677_v9 }
 0x1c9   : > { %v685_v10 = vpack.c.bf16 %v676_v8, %v675_v7 }
 0x1cb   : > { %1114 = vmatprep.mubr.bf16.mxu0 %v685_v10 }
 0x1cc   : > { %1115 = vmatmul.mubr.bf16.gmra.mxu0 %v686_v11 }
 0x274   : > { %v1104_v13 = vpop.f32.mrf.mxu0 }
 0x275   : > { %v801_v14 = vadd.f32 %v1104_v13, %v980_v12 }
 0x276   : > { %v792_v15 = vpop.f32.mrf.mxu0 }
 0x277   : > { %857 = vst [vmem:[%s1412_s18 + $0x10] sm:$0xff] %v801_v14  ;;  %v793_v16 = vadd.f32 %v980_v12, %v792_v15 }
 0x278   : > { %v1105_v17 = vpop.f32.mrf.mxu0 }
 0x279   : > { %855 = vst [vmem:[%s1412_s18] sm:$0xff] %v793_v16  ;;  %v804_v18 = vadd.f32 %v1105_v17, %v980_v12 }
 0x27a   : > { %v795_v19 = vpop.f32.mrf.mxu0 }
 0x27b   : > { %858 = vst [vmem:[%s1412_s18 + $0x18] sm:$0xff] %v804_v18  ;;  %v796_v20 = vadd.f32 %v980_v12, %v795_v19 }
 0x27c   : > { %v1108_v21 = vpop.f32.mrf.mxu0 }
 0x27d   : > { %856 = vst [vmem:[%s1412_s18 + $0x8] sm:$0xff] %v796_v20  ;;  %v817_v22 = vadd.f32 %v1108_v21, %v980_v12 }
 0x27e   : > { %v808_v23 = vpop.f32.mrf.mxu0 }
 0x27f   : > { %861 = vst [vmem:[%s1412_s18 + $0x30] sm:$0xff] %v817_v22  ;;  %v809_v24 = vadd.f32 %v980_v12, %v808_v23 }
 0x280   : > { %v1109_v25 = vpop.f32.mrf.mxu0 }
 0x281   : > { %859 = vst [vmem:[%s1412_s18 + $0x20] sm:$0xff] %v809_v24  ;;  %v820_v26 = vadd.f32 %v1109_v25, %v980_v12 }
 0x282   : > { %v811_v27 = vpop.f32.mrf.mxu0 }
 0x283   : > { %862 = vst [vmem:[%s1412_s18 + $0x38] sm:$0xff] %v820_v26  ;;  %v812_v28 = vadd.f32 %v980_v12, %v811_v27 }
 0x284   : > { %v1112_v29 = vpop.f32.mrf.mxu0 }
 0x285   : > { %860 = vst [vmem:[%s1412_s18 + $0x28] sm:$0xff] %v812_v28  ;;  %v833_v30 = vadd.f32 %v1112_v29, %v980_v12 }
 0x286   : > { %v824_v31 = vpop.f32.mrf.mxu0 }
 0x287   : > { %865 = vst [vmem:[%s1412_s18 + $0x50] sm:$0xff] %v833_v30  ;;  %v825_v32 = vadd.f32 %v980_v12, %v824_v31 }
 0x288   : > { %v1113_v33 = vpop.f32.mrf.mxu0 }
 0x289   : > { %863 = vst [vmem:[%s1412_s18 + $0x40] sm:$0xff] %v825_v32  ;;  %v836_v34 = vadd.f32 %v1113_v33, %v980_v12 }
 0x28a   : > { %v827_v35 = vpop.f32.mrf.mxu0 }
 0x28b   : > { %866 = vst [vmem:[%s1412_s18 + $0x58] sm:$0xff] %v836_v34  ;;  %v828_v36 = vadd.f32 %v980_v12, %v827_v35 }
 0x28c   : > { %v1116_v37 = vpop.f32.mrf.mxu0 }
 0x28d   : > { %864 = vst [vmem:[%s1412_s18 + $0x48] sm:$0xff] %v828_v36  ;;  %v849_v38 = vadd.f32 %v1116_v37, %v980_v12 }
 0x28e   : > { %v840_v39 = vpop.f32.mrf.mxu0 }
 0x28f   : > { %869 = vst [vmem:[%s1412_s18 + $0x70] sm:$0xff] %v849_v38  ;;  %v841_v40 = vadd.f32 %v980_v12, %v840_v39 }
 0x290   : > { %v1117_v41 = vpop.f32.mrf.mxu0 }
 0x291   : > { %867 = vst [vmem:[%s1412_s18 + $0x60] sm:$0xff] %v841_v40  ;;  %v852_v42 = vadd.f32 %v1117_v41, %v980_v12 }
 0x292   : > { %v843_v43 = vpop.f32.mrf.mxu0 }
 0x293   : > { %870 = vst [vmem:[%s1412_s18 + $0x78] sm:$0xff] %v852_v42  ;;  %v844_v44 = vadd.f32 %v980_v12, %v843_v43 }
 0x295   : > { %868 = vst [vmem:[%s1412_s18 + $0x68] sm:$0xff] %v844_v44 }
 0x296   : > { %1197 = shalt.err (!%p1194_p3)
}
 0x297   : > { %s1198_s14 = scalar_lea.hbm %s1433_s23, 2048  ;;  %s1202_s17 = scalar_lea.hbm %s1488_s7, 4096 }
 0x298   : > { %p1199_p4 = scmp.ne.s32.totalorder %s1433_s23, %s1198_s14  ;;  %p1203_p9 = scmp.lt.s32.totalorder %s1433_s23, %s1488_s7 }
 0x299   : > { %p1204_p10 = scmp.lt.s32.totalorder %s1202_s17, %s1198_s14 }
 0x29a   : > { %p1200_p7 = pnand %p1199_p4, %p1327_p5 }
 0x29b   : > { %p1205_p11 = por %p1204_p10, %p1203_p9 }
 0x29c   : > { %p1201_p8 = pneg %p1200_p7 }
 0x29e   : > { %p1206_p12 = pnand %p1205_p11, %p1201_p8 }
 0x2a0   : > { %1209 = shalt.err (!%p1206_p12)
}
 0x2a1   : > { %s1247_s21 = smov 128   ;;  %s1248_s22 = smov 8  }
 0x2a2   : > { %1119 = dma.vmem_to_hbm [thread:$0]  (%p1327_p5), %s1435_s20, 2048, %s1433_s23, %s1441_s28, %s1247_s21, %s1247_s21, %s1248_s22  }
 0x2a3 PF: > { %p1125_p13 = scmp.ge.s32.totalorder %s1244_s27, 2  ;;  %s900_s29 = sand.u32 1, %s1232_s24  }
 0x2a4   : > { %s901_s8 = scalar_lea.sflag [#allocation3], %s900_s29 }
 0x2a5   : > { %p1122_p0 = pnand %p1125_p13, %p1331_p6 }
 0x2a7   : > { %p1123_p1 = pneg %p1122_p0 }
 0x2a9   : > { %1227 = dma.done.wait (%p1123_p1), %s901_s8, 2048  }
 0x2aa   : > { %1229 = vsyncadd (%p1123_p1), %s901_s8, 4294965248  ;;  %p17_p2 = scmp.ge.s32.totalorder %s1314_s30, 4   ;;  %s1491_s24 = smov %s1236_s25 }
 0x2ab   : > { %s1492_s25 = smov %s1240_s26  ;;  %s1493_s26 = smov %s1325_s10 }
 0x2ac   : > { %s1494_s27 = smov %s1314_s30  ;;  %19 = sbr.rel (!%p17_p2) target bundleno = 3 (0x3), region = 83 }
 0x2b1   :  { %906 = vsyncpa [#allocation3], 1 }
 0x2b2   :  { %908 = vsyncpa [#allocation3 + $0x1], 1 }

</bundles_post_ra>
